<compile_context>
chip_gen: v7x
topology: tpu7x:2x2x1
jax: 0.10.0
libtpu: 0.0.40
codegen_flags: <defaults>
</compile_context>

<pallas_src>
import functools
import math

import jax
import jax.numpy as jnp
from jax.experimental import pallas as pl
from jax.experimental.pallas import tpu as pltpu


def _round_up(v, m):
    return ((v + m - 1) // m) * m


# ------------------------- kernel 1: y = x @ W (bf16) ------------------------
def xw_kernel(x_ref, w_ref, y_ref):
    y_ref[...] = jnp.dot(x_ref[...], w_ref[...],
                         preferred_element_type=jnp.float32).astype(y_ref.dtype)


# ------------- kernel 2: out[i] = x[i] @ W_r + sum_k A[i,k] @ y[k] -----------
def gcn_agg_kernel(x_ref, wr_ref, a_ref, y_ref, o_ref, *, tk, y_resident):
    k = pl.program_id(1)

    @pl.when(k == 0)
    def _init():
        # residual term folded in exactly once; o_ref (block index (i,0)) stays
        # VMEM-resident across the whole k reduction -> acts as the accumulator.
        o_ref[...] = jnp.dot(x_ref[...], wr_ref[...],
                             preferred_element_type=jnp.float32)

    if y_resident:
        start = pl.multiple_of(k * tk, tk)          # y held fully in VMEM
        y_blk = y_ref[pl.ds(start, tk), :]
    else:
        y_blk = y_ref[...]                          # streamed (TK, F_pad) tile

    o_ref[...] += jnp.dot(a_ref[...], y_blk, preferred_element_type=jnp.float32)


# ------------------------------- wrapper -------------------------------------
def graph_convolution_base(x, edge_index, weight, weight_r):
    """Forward pass of GraphConvolutionBase (residual=True).

    x:          (N, F_in)  float32 node features
    edge_index: (2, E)     int32   [row; col] edge list
    weight:     (F_in, F_out)
    weight_r:   (F_in, F_out)
    returns:    (N, F_out) float32
    """
    N, f_in = x.shape
    f_out = weight.shape[1]

    # ---- adaptive tile / padding budget ----
    n128 = _round_up(max(N, 8), 128)
    if n128 <= 1024:
        TM = TK = n_pad = n128
    else:
        TM = TK = 128
        for t in (1024, 512, 256):
            # accept a larger tile only if the extra zero-padding stays ~<=12.5%
            if _round_up(N, t) - n128 <= max(N // 8, 128):
                TM = TK = t
                break
        n_pad = _round_up(N, TM)
    f_out_pad = _round_up(f_out, 128)               # lane-dense output stores

    # keep y fully VMEM-resident when total live VMEM stays well under the
    # v7x scoped budget (double-buffer worst case assumed for every operand)
    vmem_budget = 24 * 1024 * 1024
    resident_y_bytes = 2 * n_pad * f_out_pad * 2                      # bf16 y
    per_step_bytes = (2 * TM * TK * 2                                 # A (bf16)
                      + 2 * TM * f_out_pad * 4                        # out (f32)
                      + 2 * TM * f_in * 4                             # x tile
                      + f_in * f_out_pad * 4)                         # W_r
    y_resident = (resident_y_bytes + per_step_bytes) <= vmem_budget

    # ---- glue (plain JAX): normalized adjacency scattered directly at bf16 ----
    row = edge_index[0]
    col = edge_index[1]
    deg = jnp.zeros((N,), jnp.float32).at[col].add(1.0)
    value = jnp.sqrt(1.0 / deg[col]) * jnp.sqrt(1.0 / deg[row])
    value = jnp.nan_to_num(value, nan=0.0, posinf=0.0, neginf=0.0)
    # SparseTensor(row=col, col=row, value) -> A[col[e], row[e]] = value[e]
    adj = jnp.zeros((n_pad, n_pad), jnp.bfloat16).at[col, row].add(
        value.astype(jnp.bfloat16))

    x_pad = jnp.zeros((n_pad, f_in), jnp.float32).at[:N, :].set(
        x.astype(jnp.float32))
    w_pad = jnp.zeros((f_in, f_out_pad), jnp.float32).at[:, :f_out].set(
        weight.astype(jnp.float32))
    wr_pad = jnp.zeros((f_in, f_out_pad), jnp.float32).at[:, :f_out].set(
        weight_r.astype(jnp.float32))

    # ---- kernel 1: y = x @ W (bf16) ----
    y = pl.pallas_call(
        xw_kernel,
        out_shape=jax.ShapeDtypeStruct((n_pad, f_out_pad), jnp.bfloat16),
        grid=(n_pad // TM,),
        in_specs=[
            pl.BlockSpec((TM, f_in), lambda i: (i, 0)),
            pl.BlockSpec((f_in, f_out_pad), lambda i: (0, 0)),
        ],
        out_specs=pl.BlockSpec((TM, f_out_pad), lambda i: (i, 0)),
        compiler_params=pltpu.CompilerParams(
            dimension_semantics=("parallel",),
            vmem_limit_bytes=32 * 1024 * 1024),
    )(x_pad, w_pad)

    # ---- kernel 2: out = x @ W_r + A @ y, k-last reduction grid ----
    grid = (n_pad // TM, n_pad // TK)
    if y_resident:
        y_spec = pl.BlockSpec((n_pad, f_out_pad), lambda i, k: (0, 0))
    else:
        y_spec = pl.BlockSpec((TK, f_out_pad), lambda i, k: (k, 0))

    y_reads = 1 if y_resident else (n_pad // TM)
    flops = 2 * n_pad * n_pad * f_out_pad + 2 * n_pad * f_in * f_out_pad
    bytes_accessed = (adj.size * 2                         # A streamed once
                      + y.size * 2 * y_reads               # y resident / re-read
                      + x_pad.size * 4 + wr_pad.size * 4   # residual inputs
                      + n_pad * f_out_pad * 4)             # output write

    out = pl.pallas_call(
        functools.partial(gcn_agg_kernel, tk=TK, y_resident=y_resident),
        out_shape=jax.ShapeDtypeStruct((n_pad, f_out_pad), jnp.float32),
        grid_spec=pltpu.PrefetchScalarGridSpec(
            num_scalar_prefetch=0,
            grid=grid,
            in_specs=[
                pl.BlockSpec((TM, f_in), lambda i, k: (i, 0)),         # x rows
                pl.BlockSpec((f_in, f_out_pad), lambda i, k: (0, 0)),  # W_r
                pl.BlockSpec((TM, TK), lambda i, k: (i, k)),           # A tile
                y_spec,                                                # y
            ],
            out_specs=pl.BlockSpec((TM, f_out_pad), lambda i, k: (i, 0)),
        ),
        compiler_params=pltpu.CompilerParams(
            dimension_semantics=("parallel", "arbitrary"),
            vmem_limit_bytes=32 * 1024 * 1024),
        cost_estimate=pl.CostEstimate(
            flops=int(flops), transcendentals=0,
            bytes_accessed=int(bytes_accessed)),
    )(x_pad, wr_pad, adj, y)

    return out[:N, :f_out]


if __name__ == "__main__":
    key = jax.random.PRNGKey(0)
    k_x, k_e, k_w, k_wr = jax.random.split(key, 4)

    N = 16          # number of graph nodes
    E = 32          # number of edges
    IN_FEATURES = 8
    OUT_FEATURES = 32

    # node features
    x = jax.random.normal(k_x, (N, IN_FEATURES), dtype=jnp.float32)

    # deterministic random edge list (2, E): [row; col]
    edge_index = jax.random.randint(k_e, (2, E), 0, N, dtype=jnp.int32)

    # parameters: uniform(-stdv, stdv), stdv = 1/sqrt(out_features)
    stdv = 1.0 / math.sqrt(OUT_FEATURES)
    weight = jax.random.uniform(
        k_w, (IN_FEATURES, OUT_FEATURES), minval=-stdv, maxval=stdv,
        dtype=jnp.float32)
    weight_r = jax.random.uniform(
        k_wr, (IN_FEATURES, OUT_FEATURES), minval=-stdv, maxval=stdv,
        dtype=jnp.float32)

    out = graph_convolution_base(x, edge_index, weight, weight_r)
    jax.block_until_ready(out)

    # pure-JAX f32 reference of the same math
    row, col = edge_index[0], edge_index[1]
    deg = jnp.zeros((N,), jnp.float32).at[col].add(1.0)
    val = jnp.nan_to_num(
        jnp.sqrt(1.0 / deg[col]) * jnp.sqrt(1.0 / deg[row]),
        nan=0.0, posinf=0.0, neginf=0.0)
    A = jnp.zeros((N, N), jnp.float32).at[col, row].add(val)
    ref = (A @ x) @ weight + x @ weight_r

    # bf16 adjacency / xW path -> looser tolerance than pure-f32
    assert jnp.allclose(out, ref, atol=2e-2, rtol=2e-2), "mismatch vs reference"

    print("KERNEL_OK")
</pallas_src>

<mosaic_0001>
module attributes {stable_mosaic.version = 11 : i64} {
  func.func @xw_kernel(%arg0: i32, %arg1: memref<128x8xf32, #tpu.memory_space<vmem>>, %arg2: memref<8x128xf32, #tpu.memory_space<vmem>>, %arg3: memref<128x128xbf16, #tpu.memory_space<vmem>>) attributes {dimension_semantics = [#tpu.dimension_semantics<parallel>], iteration_bounds = array<i64: 1>, scalar_prefetch = 0 : i64, scratch_operands = 0 : i64, tpu.core_type = #tpu.core_type<tc>, window_params = [{transform_indices = @transform_0, window_bounds = array<i64: 128, 8>}, {pipeline_mode = #tpu.pipeline_mode<synchronous>, transform_indices = @transform_1, window_bounds = array<i64: 8, 128>}, {transform_indices = @transform_2, window_bounds = array<i64: 128, 128>}]} {
    %c0 = arith.constant 0 : index
    %c0_0 = arith.constant 0 : index
    %0 = vector.load %arg1[%c0, %c0_0] : memref<128x8xf32, #tpu.memory_space<vmem>>, vector<128x8xf32>
    %c0_1 = arith.constant 0 : index
    %c0_2 = arith.constant 0 : index
    %1 = vector.load %arg2[%c0_1, %c0_2] : memref<8x128xf32, #tpu.memory_space<vmem>>, vector<8x128xf32>
    %cst = arith.constant dense<0.000000e+00> : vector<128x128xf32>
    %2 = tpu.matmul %0, %1, %cst {dimension_numbers = #tpu.dot_dimension_numbers<[1], [0], [0], [1], [0, 0, 1, 1], [], []>} : vector<128x8xf32>, vector<8x128xf32>, vector<128x128xf32> -> vector<128x128xf32>
    %3 = arith.truncf %2 : vector<128x128xf32> to vector<128x128xbf16>
    %c0_3 = arith.constant 0 : index
    %c0_4 = arith.constant 0 : index
    %4 = vector.load %arg3[%c0_3, %c0_4] : memref<128x128xbf16, #tpu.memory_space<vmem>>, vector<128x128xbf16>
    tpu.vector_store %arg3[%c0_3, %c0_4], %3 {strides = array<i32>} : memref<128x128xbf16, #tpu.memory_space<vmem>>, vector<128x128xbf16>,
    return
  }
  func.func @transform_0(%arg0: i32) -> (i32, i32) {
    %c0_i32 = arith.constant 0 : i32
    %c0_i32_0 = arith.constant 0 : i32
    return %arg0, %c0_i32 : i32, i32
  }
  func.func @transform_1(%arg0: i32) -> (i32, i32) {
    %c0_i32 = arith.constant 0 : i32
    %c0_i32_0 = arith.constant 0 : i32
    %c0_i32_1 = arith.constant 0 : i32
    return %c0_i32, %c0_i32_0 : i32, i32
  }
  func.func @transform_2(%arg0: i32) -> (i32, i32) {
    %c0_i32 = arith.constant 0 : i32
    %c0_i32_0 = arith.constant 0 : i32
    return %arg0, %c0_i32 : i32, i32
  }
}

</mosaic_0001>

<bundles_post_ra>
// kernel: tpu_custom_call.1
= control target key start
LH: loop header
LB: loop body
LE: loop exit
PB: predicated region body
PF: predicated region fallthrough
CT: control target
= control target key end

     0   :  { %vm29_vm0 = vcmask 64512   ;;  %s583_s0 = inlined_call_operand.vmem [shape: f32[128,8], index: 0, kind: input, shape index: {}]   ;;  %s584_s1 = inlined_call_operand.vmem [shape: f32[8,128], index: 1, kind: input, shape index: {}]   ;;  %s585_s2 = inlined_call_operand.hbm [shape: bf16[128,128], index: 2, kind: output, shape index: {}]  }
   0x1   :  { %v28_v0 = vld [vmem:[%s584_s1] sm:$0xff]  ;;  %v13_v3 = vld [vmem:[%s583_s0 + $0x8] sm:$0xff]  ;;  %v14_v5 = vld [vmem:[%s583_s0 + $0x10] sm:$0xff] }
   0x2   :  { %v12_v1 = vld [vmem:[%s583_s0] sm:$0xff]  ;;  %431 = vmatprep.subr.mxu0 %v28_v0  ;;  %457 = vmatprep.subr.mxu1 %v28_v0  ;;  %v21_v4 = vld [vmem:[%s583_s0 + $0x48] sm:$0xff]  ;;  %v22_v6 = vld [vmem:[%s583_s0 + $0x50] sm:$0xff] }
   0x3   :  { %v20_v2 = vld [vmem:[%s583_s0 + $0x40] sm:$0xff]  ;;  %432 = vmatpush3.msra.mxu0 %v28_v0  ;;  %458 = vmatpush3.msra.mxu1 %v28_v0  ;;  %v15_v7 = vld [vmem:[%s583_s0 + $0x18] sm:$0xff] }
   0x4   :  { %433 = vmatprep.mubr.msk.f32.mxu0 %vm29_vm0, %v12_v1  ;;  %445 = vmatprep.mubr.msk.f32.mxu1 %vm29_vm0, %v20_v2  ;;  %v23_v8 = vld [vmem:[%s583_s0 + $0x58] sm:$0xff] }
   0x5   :  { %434 = vmatmul.mubr.msk.f32.vlgmr.msra.gmra.mrb[0].mxu0 %vm29_vm0, %v13_v3  ;;  %446 = vmatmul.mubr.msk.f32.vlgmr.msra.gmra.mrb[0].mxu1 %vm29_vm0, %v21_v4 }
   0x6   :  { %436 = vmatprep.mubr.msk.f32.mxu0 %vm29_vm0, %v14_v5  ;;  %448 = vmatprep.mubr.msk.f32.mxu1 %vm29_vm0, %v22_v6 }
   0x7   :  { %7 = vsyncpa [#allocation3], 0  ;;  %v16_v9 = vld [vmem:[%s583_s0 + $0x20] sm:$0xff]  ;;  %v17_v11 = vld [vmem:[%s583_s0 + $0x28] sm:$0xff] }
   0x8   :  { %v24_v10 = vld [vmem:[%s583_s0 + $0x60] sm:$0xff]  ;;  %v25_v12 = vld [vmem:[%s583_s0 + $0x68] sm:$0xff]  ;;  %v18_v13 = vld [vmem:[%s583_s0 + $0x30] sm:$0xff] }
   0x9   :  { %437 = vmatmul.mubr.msk.f32.gmra.mrb[2].mxu0 %vm29_vm0, %v15_v7  ;;  %449 = vmatmul.mubr.msk.f32.gmra.mrb[2].mxu1 %vm29_vm0, %v23_v8  ;;  %v26_v14 = vld [vmem:[%s583_s0 + $0x70] sm:$0xff]  ;;  %v19_v15 = vld [vmem:[%s583_s0 + $0x38] sm:$0xff] }
   0xa   :  { %439 = vmatprep.mubr.msk.f32.mxu0 %vm29_vm0, %v16_v9  ;;  %451 = vmatprep.mubr.msk.f32.mxu1 %vm29_vm0, %v24_v10  ;;  %v27_v16 = vld [vmem:[%s583_s0 + $0x78] sm:$0xff]  ;;  %s486_s0 = smov [#allocation2]  }
   0xb   :  { %s308_s14 = sshll.u32 %s486_s0, 4  ;;  %s309_s14 = int_to_ptr.vmem [resolvable:$true] %s308_s14 }
   0xc   :  { %s462_s15 = scalar_lea.vmem %s309_s14, 1024  ;;  %p467_p1 = scmp.lt.s32.totalorder %s309_s14, %s309_s14 }
   0xd   :  { %440 = vmatmul.mubr.msk.f32.gmra.mrb[4].mxu0 %vm29_vm0, %v17_v11  ;;  %452 = vmatmul.mubr.msk.f32.gmra.mrb[4].mxu1 %vm29_vm0, %v25_v12  ;;  %p463_p0 = scmp.ne.s32.totalorder %s309_s14, %s462_s15  ;;  %p468_p2 = scmp.lt.s32.totalorder %s462_s15, %s462_s15 }
   0xe   :  { %442 = vmatprep.mubr.msk.f32.mxu0 %vm29_vm0, %v18_v13  ;;  %454 = vmatprep.mubr.msk.f32.mxu1 %vm29_vm0, %v26_v14 }
   0xf   :  { %p469_p3 = por %p468_p2, %p467_p1 }
  0x11   :  { %443 = vmatmul.mubr.msk.f32.gmra.mrb[6].mxu0 %vm29_vm0, %v19_v15  ;;  %455 = vmatmul.mubr.msk.f32.gmra.mrb[6].mxu1 %vm29_vm0, %v27_v16  ;;  %p470_p4 = pnand %p469_p3, %p463_p0 }
  0xd8   :  { %v435_v17 = vpop.f32.mrb[0].mxu0  ;;  %v447_v18 = vpop.f32.mrb[0].mxu1 }
  0xd9   :  { %v144_v19 = vpop.f32.mrb[1].mxu0  ;;  %v184_v20 = vpop.f32.mrb[1].mxu1 }
  0xda   :  { %v370_v21 = vpack.c.bf16 %v435_v17, %v144_v19  ;;  %v390_v22 = vpack.c.bf16 %v447_v18, %v184_v20 }
  0xdc   :  { %371 = vst [vmem:[#allocation2] sm:$0xff] %v370_v21   ;;  %410 = vst [vmem:[#allocation2 + $0x20] sm:$0xff] %v390_v22   ;;  %v438_v23 = vpop.f32.mrb[2].mxu0  ;;  %v450_v24 = vpop.f32.mrb[2].mxu1 }
  0xdd   :  { %v154_v25 = vpop.f32.mrb[3].mxu0  ;;  %v194_v26 = vpop.f32.mrb[3].mxu1 }
  0xde   :  { %v375_v27 = vpack.c.bf16 %v438_v23, %v154_v25  ;;  %v395_v28 = vpack.c.bf16 %v450_v24, %v194_v26 }
  0xe0   :  { %407 = vst [vmem:[#allocation2 + $0x8] sm:$0xff] %v375_v27   ;;  %411 = vst [vmem:[#allocation2 + $0x28] sm:$0xff] %v395_v28   ;;  %v441_v29 = vpop.f32.mrb[4].mxu0  ;;  %v453_v30 = vpop.f32.mrb[4].mxu1 }
  0xe1   :  { %v164_v31 = vpop.f32.mrb[5].mxu0  ;;  %v204_v32 = vpop.f32.mrb[5].mxu1 }
  0xe2   :  { %v380_v33 = vpack.c.bf16 %v441_v29, %v164_v31  ;;  %v400_v34 = vpack.c.bf16 %v453_v30, %v204_v32 }
  0xe4   :  { %408 = vst [vmem:[#allocation2 + $0x10] sm:$0xff] %v380_v33   ;;  %412 = vst [vmem:[#allocation2 + $0x30] sm:$0xff] %v400_v34   ;;  %v444_v35 = vpop.f32.mrb[6].mxu0  ;;  %v456_v36 = vpop.f32.mrb[6].mxu1 }
  0xe5   :  { %v174_v37 = vpop.f32.mrb[7].mxu0  ;;  %v214_v38 = vpop.f32.mrb[7].mxu1 }
  0xe6   :  { %v385_v39 = vpack.c.bf16 %v444_v35, %v174_v37  ;;  %v405_v40 = vpack.c.bf16 %v456_v36, %v214_v38 }
  0xe8   :  { %409 = vst [vmem:[#allocation2 + $0x18] sm:$0xff] %v385_v39   ;;  %413 = vst [vmem:[#allocation2 + $0x38] sm:$0xff] %v405_v40  }
  0xe9   :  { %473 = shalt.err (!%p470_p4)
}
  0xea   :  { %s474_s18 = scalar_lea.hbm %s585_s2, 1024 }
  0xeb   :  { %p475_p5 = scmp.ne.s32.totalorder %s585_s2, %s474_s18  ;;  %p478_p6 = scmp.lt.u32.totalorder %s474_s18, %s585_s2 }
  0xed   :  { %p480_p7 = pnand %p478_p6, %p475_p5 }
  0xef   :  { %483 = shalt.err (!%p480_p7)
}
  0xf0   :  { %s487_s22 = smov 64   ;;  %s488_s23 = smov 4  }
  0xf1   :  { %314 = dma.vmem_to_hbm [thread:$0]  %s309_s14, 1024, %s585_s2, [#allocation3], %s487_s22, %s487_s22, %s488_s23  }
  0xf2   :  { %484 = dma.done.wait [#allocation3], 1024  }
  0xf3   :  { %485 = vsyncadd [#allocation3], 4294966272 }
  0xf4   :  { %318 = vsyncpa [#allocation3], 1 }

</bundles_post_ra>
